<compile_context>
chip_gen: v7x
topology: tpu7x:2x2x1
jax: 0.10.0
libtpu: 0.0.40
codegen_flags: <defaults>
</compile_context>

<pallas_src>
import functools
import math

import jax
import jax.numpy as jnp
from jax import lax
from jax.experimental import pallas as pl
from jax.experimental.pallas import tpu as pltpu

EPS = 1e-12


def _hnonlin_kernel(x_ref, b_ref, o_ref, *, eps, c_lanes, lanes):
    """x_ref/o_ref: (tm, lanes); b_ref: (1, lanes).

    Lane layout has period 2*c_lanes: [real c_lanes | imag c_lanes] for each
    (spatial position, rotation order) group; b_ref holds b[r, c] on both
    lanes of a pair.  Invariant: lanes % (2*c_lanes) == 0, lanes 0..C-1 are
    real and lanes lanes-C..lanes-1 are imaginary, so the wrap-around garbage
    from each roll only lands on lanes where that roll is NOT selected.
    """
    x = x_ref[...]                          # (tm, lanes)
    b = b_ref[...]                          # (1, lanes)

    sq = x * x
    # Partner lane of the same complex pair: +c_lanes for real lanes,
    # -c_lanes for imaginary lanes.  pltpu.roll(v, s)[i] == v[i - s].
    fwd = pltpu.roll(sq, shift=c_lanes, axis=1)           # fwd[i] = sq[i - C]
    bwd = pltpu.roll(sq, shift=lanes - c_lanes, axis=1)   # bwd[i] = sq[i + C]
    lane = lax.broadcasted_iota(jnp.int32, (1, lanes), 1)
    is_real = (lane % (2 * c_lanes)) < c_lanes             # (1, lanes) bool
    partner = jnp.where(is_real, bwd, fwd)                 # broadcast over rows

    ssum = jnp.maximum(sq + partner, eps)   # clamp |z|^2 (matches torch.clamp)
    inv = lax.rsqrt(ssum)                   # 1 / |z|           (EUP, free slot)
    c = jnp.maximum(1.0 + b * inv, 0.0)     # == relu(|z| + b) / |z|
    o_ref[...] = c * x


def _plan_lanes(n_rows, inner, *, lane_target=1024, lane_max=8192):
    """Pick L (spatial positions folded into lanes) so lanes = inner*L is a
    multiple of 128; prefer L dividing n_rows so the flat reshape is exact."""
    base = 128 // math.gcd(inner, 128)      # smallest fold giving dense lanes
    L = base
    exact = n_rows > 0 and n_rows % L == 0
    if exact:
        while (inner * L < lane_target
               and n_rows % (2 * L) == 0
               and inner * 2 * L <= lane_max):
            L *= 2
    return L, inner * L, exact


def _plan_row_tile(rows, lanes, max_block_bytes):
    """Biggest row tile (multiple of 8) under the byte budget, but keep >= 2
    row blocks when the input is big enough (megacore sharding on v7x)."""
    bytes_per_row = lanes * 4
    tm_cap = max(8, ((max_block_bytes // bytes_per_row) // 8) * 8)
    if rows < 16:
        return rows                          # single full-extent block
    tm = min(tm_cap, ((rows // 2) // 8) * 8)
    return max(8, tm)


def _chip_budget():
    """(max_block_bytes, vmem_limit_bytes) chosen per TPU generation."""
    try:
        cap = getattr(pltpu.get_tpu_info(), "vmem_capacity_bytes", None)
    except Exception:
        cap = None
    if cap is not None and cap >= (100 << 20):   # v5e / v6e: 128 MiB VMEM
        return 12 << 20, 64 << 20
    return 8 << 20, 48 << 20                     # v7x (64 MiB VMEM) or unknown


def hnonlin_forward(x, b, *, eps=EPS):
    """x: [B, H, W, R, 2, C] float32; b: [1, 1, 1, R, 1, C] float32."""
    B, H, W, R, two, C = x.shape
    assert two == 2
    inner = R * 2 * C                        # contiguous elems per spatial pos
    N = B * H * W

    L, lanes, exact = _plan_lanes(N, inner)

    xf = x.reshape(-1)                       # contiguous (free) reshape
    if exact:
        rows = N // L
    else:
        # TODO(synk): ragged fallback (B*H*W not a multiple of 128/gcd) pads
        # the flat view; costs one extra HBM round-trip of x.
        rows = pl.cdiv(N, L)
        xf = jnp.pad(xf, (0, rows * lanes - xf.size))
    xf = xf.reshape(rows, lanes)

    # Per-lane bias: b[r, c] replicated on real & imag lanes, tiled L times.
    b_wide = jnp.tile(
        jnp.broadcast_to(b.reshape(R, 1, C), (R, 2, C)).reshape(1, inner), (1, L))

    max_block_bytes, vmem_limit = _chip_budget()
    tm = _plan_row_tile(rows, lanes, max_block_bytes)
    n_blocks = pl.cdiv(rows, tm)             # Pallas masks the ragged last block

    compiler_kwargs = dict(dimension_semantics=("parallel",))
    block_bytes = tm * lanes * 4
    if 4 * block_bytes > 8 * 1024 * 1024:    # double-buffered in + out blocks
        compiler_kwargs["vmem_limit_bytes"] = vmem_limit

    kernel = functools.partial(_hnonlin_kernel, eps=eps, c_lanes=C, lanes=lanes)

    out = pl.pallas_call(
        kernel,
        out_shape=jax.ShapeDtypeStruct((rows, lanes), x.dtype),
        grid_spec=pltpu.PrefetchScalarGridSpec(
            num_scalar_prefetch=0,
            grid=(n_blocks,),
            in_specs=[
                pl.BlockSpec((tm, lanes), lambda i: (i, 0)),
                pl.BlockSpec((1, lanes), lambda i: (0, 0)),
            ],
            out_specs=pl.BlockSpec((tm, lanes), lambda i: (i, 0)),
        ),
        compiler_params=pltpu.CompilerParams(**compiler_kwargs),
    )(xf, b_wide)

    out = out.reshape(-1)
    if not exact:
        out = out[: N * inner]
    return out.reshape(B, H, W, R, 2, C)


def hnonlin_reference(x, b, eps=EPS):
    """Pure-JAX reference of the PyTorch forward (fnc = ReLU)."""
    mag = jnp.sqrt(jnp.maximum(jnp.sum(x * x, axis=4, keepdims=True), eps))
    c = jnp.maximum(mag + b, 0.0) / mag
    return c * x


if __name__ == "__main__":
    # Small shapes implied by the module: [batch, h, w, rotation_order, 2, channels]
    B, H, W, R, C = 2, 16, 16, 3, 4
    key = jax.random.PRNGKey(0)
    kx, kb = jax.random.split(key)

    x = jax.random.normal(kx, (B, H, W, R, 2, C), dtype=jnp.float32)

    # Deterministic xavier-normal-style init for b of shape (1,1,1,R,1,C).
    fan = R * C
    std = (2.0 / (fan + fan)) ** 0.5
    b = std * jax.random.normal(kb, (1, 1, 1, R, 1, C), dtype=jnp.float32)

    out = jax.block_until_ready(hnonlin_forward(x, b))
    ref = hnonlin_reference(x, b)

    assert out.shape == (B, H, W, R, 2, C)
    assert jnp.allclose(out, ref, atol=1e-5, rtol=1e-4), "mismatch vs reference"

    print("KERNEL_OK")
</pallas_src>

<mosaic_0001>
module attributes {stable_mosaic.version = 11 : i64} {
  func.func @_hnonlin_kernel(%arg0: i32, %arg1: memref<8x1536xf32, #tpu.memory_space<vmem>>, %arg2: memref<1x1536xf32, #tpu.memory_space<vmem>>, %arg3: memref<8x1536xf32, #tpu.memory_space<vmem>>) attributes {dimension_semantics = [#tpu.dimension_semantics<parallel>], iteration_bounds = array<i64: 1>, scalar_prefetch = 0 : i64, scratch_operands = 0 : i64, tpu.core_type = #tpu.core_type<tc>, window_params = [{transform_indices = @transform_0, window_bounds = array<i64: 8, 1536>}, {pipeline_mode = #tpu.pipeline_mode<synchronous>, transform_indices = @transform_1, window_bounds = array<i64: 1, 1536>}, {transform_indices = @transform_2, window_bounds = array<i64: 8, 1536>}]} {
    %c0 = arith.constant 0 : index
    %c0_0 = arith.constant 0 : index
    %0 = vector.load %arg1[%c0, %c0_0] : memref<8x1536xf32, #tpu.memory_space<vmem>>, vector<8x1536xf32>
    %c0_1 = arith.constant 0 : index
    %c0_2 = arith.constant 0 : index
    %1 = vector.load %arg2[%c0_1, %c0_2] : memref<1x1536xf32, #tpu.memory_space<vmem>>, vector<1x1536xf32>
    %2 = arith.mulf %0, %0 : vector<8x1536xf32>
    %c4_i32 = arith.constant 4 : i32
    %3 = tpu.dynamic_rotate %2 by %c4_i32 dim 1 : vector<8x1536xf32>, i32 -> vector<8x1536xf32>
    %c1532_i32 = arith.constant 1532 : i32
    %4 = tpu.dynamic_rotate %2 by %c1532_i32 dim 1 : vector<8x1536xf32>, i32 -> vector<8x1536xf32>
    %5 = tpu.iota {dimensions = array<i32: 1>} : vector<1x1536xi32>
    %c8_i32 = arith.constant 8 : i32
    %c0_i32 = arith.constant 0 : i32
    %6 = arith.cmpi eq, %c8_i32, %c0_i32 : i32
    %c1_i32 = arith.constant 1 : i32
    %7 = arith.select %6, %c1_i32, %c8_i32 : i32
    %8 = vector.broadcast %7 : i32 to vector<1x1536xi32>
    %9 = arith.remsi %5, %8 : vector<1x1536xi32>
    %c0_i32_3 = arith.constant 0 : i32
    %10 = vector.broadcast %c0_i32_3 : i32 to vector<1x1536xi32>
    %11 = arith.cmpi ne, %9, %10 : vector<1x1536xi32>
    %c0_i32_4 = arith.constant 0 : i32
    %12 = vector.broadcast %c0_i32_4 : i32 to vector<1x1536xi32>
    %13 = arith.cmpi slt, %9, %12 : vector<1x1536xi32>
    %c0_i32_5 = arith.constant 0 : i32
    %14 = arith.cmpi slt, %7, %c0_i32_5 : i32
    %15 = vector.broadcast %14 : i1 to vector<1x1536xi1>
    %16 = vector.broadcast %15 : vector<1x1536xi1> to vector<1x1536xi1>
    %17 = arith.xori %13, %16 : vector<1x1536xi1>
    %18 = arith.andi %17, %11 : vector<1x1536xi1>
    %19 = vector.broadcast %7 : i32 to vector<1x1536xi32>
    %20 = arith.addi %9, %19 : vector<1x1536xi32>
    %21 = arith.select %18, %20, %9 : vector<1x1536xi1>, vector<1x1536xi32>
    %c4_i32_6 = arith.constant 4 : i32
    %22 = vector.broadcast %c4_i32_6 : i32 to vector<1x1536xi32>
    %23 = arith.cmpi slt, %21, %22 : vector<1x1536xi32>
    %24 = vector.shape_cast %23 : vector<1x1536xi1> to vector<1x1536xi1>
    %25 = vector.broadcast %24 : vector<1x1536xi1> to vector<8x1536xi1>
    %26 = arith.select %25, %4, %3 : vector<8x1536xi1>, vector<8x1536xf32>
    %27 = arith.addf %2, %26 : vector<8x1536xf32>
    %cst = arith.constant 9.99999996E-13 : f32
    %28 = vector.broadcast %cst : f32 to vector<8x1536xf32>
    %29 = arith.maximumf %27, %28 : vector<8x1536xf32>
    %30 = math.rsqrt %29 : vector<8x1536xf32>
    %31 = vector.broadcast %1 : vector<1x1536xf32> to vector<8x1536xf32>
    %32 = arith.mulf %31, %30 : vector<8x1536xf32>
    %cst_7 = arith.constant 1.000000e+00 : f32
    %33 = vector.broadcast %cst_7 : f32 to vector<8x1536xf32>
    %34 = arith.addf %33, %32 : vector<8x1536xf32>
    %cst_8 = arith.constant 0.000000e+00 : f32
    %35 = vector.broadcast %cst_8 : f32 to vector<8x1536xf32>
    %36 = arith.maximumf %34, %35 : vector<8x1536xf32>
    %37 = arith.mulf %36, %0 : vector<8x1536xf32>
    %c0_9 = arith.constant 0 : index
    %c0_10 = arith.constant 0 : index
    %38 = vector.load %arg3[%c0_9, %c0_10] : memref<8x1536xf32, #tpu.memory_space<vmem>>, vector<8x1536xf32>
    tpu.vector_store %arg3[%c0_9, %c0_10], %37 {strides = array<i32>} : memref<8x1536xf32, #tpu.memory_space<vmem>>, vector<8x1536xf32>,
    return
  }
  func.func @transform_0(%arg0: i32) -> (i32, i32) {
    %c0_i32 = arith.constant 0 : i32
    %c0_i32_0 = arith.constant 0 : i32
    return %arg0, %c0_i32 : i32, i32
  }
  func.func @transform_1(%arg0: i32) -> (i32, i32) {
    %c0_i32 = arith.constant 0 : i32
    %c0_i32_0 = arith.constant 0 : i32
    %c0_i32_1 = arith.constant 0 : i32
    return %c0_i32, %c0_i32_0 : i32, i32
  }
  func.func @transform_2(%arg0: i32) -> (i32, i32) {
    %c0_i32 = arith.constant 0 : i32
    %c0_i32_0 = arith.constant 0 : i32
    return %arg0, %c0_i32 : i32, i32
  }
}

</mosaic_0001>

<bundles_post_ra>
// kernel: tpu_custom_call.1
= control target key start
LH: loop header
LB: loop body
LE: loop exit
PB: predicated region body
PF: predicated region fallthrough
CT: control target
= control target key end

     0   :  { %7 = vsyncpa [#allocation3], 0  ;;  %s1017_s0 = inlined_call_operand.hbm [shape: f32[8,1536], index: 0, kind: input, shape index: {}]   ;;  %s1018_s1 = inlined_call_operand.hbm [shape: f32[1,1536], index: 1, kind: input, shape index: {}]   ;;  %s1019_s2 = inlined_call_operand.hbm [shape: f32[8,1536], index: 2, kind: output, shape index: {}]  }
   0x1   :  { %8 = vsyncpa [#allocation6], 0 }
   0x2   :  { %9 = vsyncpa [#allocation4], 0  ;;  %s616_s9 = smov [#allocation2]   ;;  %s617_s11 = smov [#allocation5]  }
   0x3   :  { %s16_s10 = sshll.u32 %s616_s9, 4  ;;  %s26_s12 = sshll.u32 %s617_s11, 4  ;;  %s17_s10 = int_to_ptr.vmem [resolvable:$true] %s16_s10  ;;  %s27_s12 = int_to_ptr.vmem [resolvable:$true] %s26_s12 }
   0x4   :  { %s544_s15 = scalar_lea.hbm %s1017_s0, 1536 }
   0x5   :  { %p545_p0 = scmp.ne.s32.totalorder %s1017_s0, %s544_s15  ;;  %p548_p1 = scmp.lt.u32.totalorder %s544_s15, %s1017_s0 }
   0x7   :  { %p550_p2 = pnand %p548_p1, %p545_p0 }
   0x9   :  { %553 = shalt.err (!%p550_p2)
}
   0xa   :  { %s554_s20 = scalar_lea.vmem %s17_s10, 1536  ;;  %p559_p4 = scmp.lt.s32.totalorder %s17_s10, %s17_s10 }
   0xb   :  { %p555_p3 = scmp.ne.s32.totalorder %s17_s10, %s554_s20  ;;  %p560_p5 = scmp.lt.s32.totalorder %s554_s20, %s554_s20 }
   0xd   :  { %p561_p6 = por %p560_p5, %p559_p4 }
   0xf   :  { %p562_p7 = pnand %p561_p6, %p555_p3 }
  0x11   :  { %565 = shalt.err (!%p562_p7)
}
  0x12   :  { %19 = dma.hbm_to_vmem [thread:$0]  %s1017_s0, 1536, %s17_s10, [#allocation3]  }
  0x13   :  { %s566_s25 = scalar_lea.hbm %s1018_s1, 192 }
  0x14   :  { %p567_p8 = scmp.ne.s32.totalorder %s1018_s1, %s566_s25  ;;  %p570_p9 = scmp.lt.u32.totalorder %s566_s25, %s1018_s1 }
  0x16   :  { %p572_p10 = pnand %p570_p9, %p567_p8 }
  0x18   :  { %575 = shalt.err (!%p572_p10)
}
  0x19   :  { %s576_s30 = scalar_lea.vmem %s27_s12, 192  ;;  %p581_p12 = scmp.lt.s32.totalorder %s27_s12, %s27_s12 }
  0x1a   :  { %p577_p11 = scmp.ne.s32.totalorder %s27_s12, %s576_s30  ;;  %p582_p13 = scmp.lt.s32.totalorder %s576_s30, %s576_s30 }
  0x1c   :  { %p583_p0 = por %p582_p13, %p581_p12 }
  0x1e   :  { %p584_p1 = pnand %p583_p0, %p577_p11 }
  0x20   :  { %587 = shalt.err (!%p584_p1)
}
  0x21   :  { %29 = dma.hbm_to_vmem [thread:$0]  %s1018_s1, 192, %s27_s12, [#allocation6]  }
  0x22   :  { %610 = dma.done.wait [#allocation3], 1536  }
  0x23   :  { %611 = vsyncadd [#allocation3], 4294965760 }
  0x24   :  { %612 = dma.done.wait [#allocation6], 192  }
  0x25   :  { %613 = vsyncadd [#allocation6], 4294967104  ;;  %v660_v0 = vld [vmem:[#allocation2 + $0x10] sm:$0xff]  ;;  %v662_v1 = vld [vmem:[#allocation2] sm:$0xff]  ;;  %s618_s1 = smov 4   ;;  %s619_s4 = smov 124   ;;  %v86_v30 = vlaneseq }
  0x26   :  { %v664_v2 = vld [vmem:[#allocation2 + $0x18] sm:$0xff]  ;;  %v668_v3 = vmul.f32 %v660_v0, %v660_v0  ;;  %v672_v4 = vmul.f32 %v662_v1, %v662_v1  ;;  %v674_v5 = vld [vmem:[#allocation2 + $0x8] sm:$0xff]  ;;  %v688_v9 = vld [vmem:[#allocation2 + $0x20] sm:$0xff]  ;;  %s620_s5 = smov [#allocation7]  }
  0x27   :  { %v680_v6 = vmul.f32 %v664_v2, %v664_v2  ;;  %v684_v7 = vmul.f32 %v674_v5, %v674_v5  ;;  %v686_v8 = vld [vmem:[#allocation2 + $0x28] sm:$0xff]  ;;  %v698_v11 = vmul.f32 %v688_v9, %v688_v9  ;;  %v700_v12 = vld [vmem:[#allocation2 + $0x38] sm:$0xff]  ;;  %v702_v13 = vld [vmem:[#allocation2 + $0x30] sm:$0xff]  ;;  %v768_v33 = vand.u32 127, %v86_v30  ;;  %s505_s6 = sshll.u32 %s620_s5, 4  ;;  %s506_s6 = int_to_ptr.vmem [resolvable:$true] %s505_s6 }
  0x28   :  { %66 = vrot.lane.b32.xlu1 %v668_v3, %s618_s1  ;;  %62 = vrot.lane.b32.xlu0 %v672_v4, %s618_s1  ;;  %v694_v10 = vmul.f32 %v686_v8, %v686_v8  ;;  %v708_v14 = vmul.f32 %v700_v12, %v700_v12  ;;  %v712_v15 = vmul.f32 %v702_v13, %v702_v13  ;;  %v714_v16 = vld [vmem:[#allocation2 + $0x48] sm:$0xff]  ;;  %v716_v17 = vld [vmem:[#allocation2 + $0x40] sm:$0xff]  ;;  %v728_v20 = vld [vmem:[#allocation2 + $0x58] sm:$0xff]  ;;  %v774_v36 = vshrl.u32 %v86_v30, 7  ;;  %s588_s7 = scalar_lea.vmem %s506_s6, 1536  ;;  %p593_p3 = scmp.lt.s32.totalorder %s506_s6, %s506_s6 }
  0x29   :  { %v722_v18 = vmul.f32 %v714_v16, %v714_v16  ;;  %v726_v19 = vmul.f32 %v716_v17, %v716_v17  ;;  %v730_v21 = vld [vmem:[#allocation2 + $0x50] sm:$0xff]  ;;  %v736_v22 = vmul.f32 %v728_v20, %v728_v20  ;;  %v138_v37 = vadd.s32 128, %v768_v33  ;;  %v788_v48 = vld [vmem:[#allocation5] sm:$0xff]  ;;  %p589_p2 = scmp.ne.s32.totalorder %s506_s6, %s588_s7  ;;  %p594_p4 = scmp.lt.s32.totalorder %s588_s7, %s588_s7 }
  0x2a   :  { %v740_v23 = vmul.f32 %v730_v21, %v730_v21  ;;  %v139_v38 = vadd.s32 256, %v768_v33  ;;  %v140_v39 = vadd.s32 384, %v768_v33  ;;  %v141_v40 = vadd.s32 512, %v768_v33 }
  0x2b   :  { %v153_v41 = vand.u32 7, %v768_v33  ;;  %v142_v42 = vadd.s32 640, %v768_v33  ;;  %v1020_v45 = vsub.s32 0, %v774_v36  ;;  %v160_v46 = vand.u32 7, %v138_v37  ;;  %p595_p5 = por %p594_p4, %p593_p3 }
  0x2c   :  { %68 = vrot.lane.b32.xlu1 %v680_v6, %s618_s1  ;;  %64 = vrot.lane.b32.xlu0 %v684_v7, %s618_s1  ;;  %v143_v47 = vadd.s32 768, %v768_v33  ;;  %v167_v49 = vand.u32 7, %v139_v38  ;;  %v174_v50 = vand.u32 7, %v140_v39  ;;  %vm125_vm0 = vcmp.lt.s32.totalorder %v768_v33, 124 }
  0x2d   :  { %v181_v51 = vand.u32 7, %v141_v40  ;;  %vm791_vm1 = vcmp.lt.s32.totalorder %v153_v41, 4  ;;  %v188_v53 = vand.u32 7, %v142_v42  ;;  %v144_v54 = vadd.s32 896, %v768_v33  ;;  %p596_p6 = pnand %p595_p5, %p589_p2 }
  0x2e   :  { %v145_v55 = vadd.s32 1024, %v768_v33  ;;  %vm88_vm2 = vcmp.lt.s32.totalorder %v768_v33, 4  ;;  %v801_v57 = vrot.slane %v788_v48, %v1020_v45  ;;  %vm805_vm3 = vcmp.lt.s32.totalorder %v160_v46, 4 }
  0x2f   :  { %v195_v60 = vand.u32 7, %v143_v47  ;;  %vm815_vm4 = vcmp.lt.s32.totalorder %v167_v49, 4  ;;  %vm819_vm5 = vcmp.lt.s32.totalorder %v174_v50, 4  ;;  %v1021_v38 = vsub.s32 1, %v774_v36 }
  0x30   :  { %72 = vrot.lane.b32.xlu1 %v694_v10, %s618_s1  ;;  %70 = vrot.lane.b32.xlu0 %v698_v11, %s618_s1  ;;  %v1022_v39 = vsub.s32 2, %v774_v36  ;;  %vm827_vm6 = vcmp.lt.s32.totalorder %v181_v51, 4  ;;  %vm832_vm7 = vcmp.lt.s32.totalorder %v188_v53, 4  ;;  %v202_v46 = vand.u32 7, %v144_v54 }
  0x31   :  { %v209_v47 = vand.u32 7, %v145_v55  ;;  %v148_v49 = vadd.s32 1408, %v768_v33  ;;  %vm840_vm8 = vcmp.lt.s32.totalorder %v195_v60, 4  ;;  %v147_v53 = vadd.s32 1280, %v768_v33 }
  0x32   :  { %v855_v60 = vrot.slane %v788_v48, %v1021_v38  ;;  %v860_v45 = vrot.slane %v788_v48, %v1022_v39  ;;  %vm868_vm9 = vcmp.lt.s32.totalorder %v202_v46, 4  ;;  %v405_v51 = vsub.s32 6, %v774_v36 }
  0x33   :  { %vm872_vm10 = vcmp.lt.s32.totalorder %v209_v47, 4  ;;  %v230_v39 = vand.u32 7, %v148_v49 }
  0x34   :  { %76 = vrot.lane.b32.xlu1 %v708_v14, %s618_s1  ;;  %74 = vrot.lane.b32.xlu0 %v712_v15, %s618_s1 }
  0x35   :  { %vm896_vm11 = vcmp.lt.s32.totalorder %v230_v39, 4 }
  0x38   :  { %80 = vrot.lane.b32.xlu1 %v722_v18, %s618_s1  ;;  %78 = vrot.lane.b32.xlu0 %v726_v19, %s618_s1 }
  0x3c   :  { %84 = vrot.lane.b32.xlu1 %v736_v22, %s618_s1  ;;  %82 = vrot.lane.b32.xlu0 %v740_v23, %s618_s1 }
  0x40   :  { %103 = vrot.lane.b32.xlu1 %v684_v7, %s619_s4  ;;  %101 = vrot.lane.b32.xlu0 %v672_v4, %s619_s4 }
  0x44   :  { %107 = vrot.lane.b32.xlu1 %v680_v6, %s619_s4  ;;  %105 = vrot.lane.b32.xlu0 %v668_v3, %s619_s4 }
  0x48   :  { %111 = vrot.lane.b32.xlu1 %v694_v10, %s619_s4  ;;  %109 = vrot.lane.b32.xlu0 %v698_v11, %s619_s4 }
  0x4c   :  { %115 = vrot.lane.b32.xlu1 %v708_v14, %s619_s4  ;;  %113 = vrot.lane.b32.xlu0 %v712_v15, %s619_s4 }
  0x50   :  { %119 = vrot.lane.b32.xlu1 %v722_v18, %s619_s4  ;;  %117 = vrot.lane.b32.xlu0 %v726_v19, %s619_s4 }
  0x54   :  { %123 = vrot.lane.b32.xlu1 %v736_v22, %s619_s4  ;;  %121 = vrot.lane.b32.xlu0 %v740_v23, %s619_s4 }
  0x9a   :  { %v756_v24 = vpop.permute.xlu1 %66  ;;  %v63_v25 = vpop.permute.xlu0 %62 }
  0x9e   :  { %v758_v26 = vpop.permute.xlu1 %68  ;;  %v65_v27 = vpop.permute.xlu0 %64 }
  0x9f   :  { %v98_v50 = vsel %vm88_vm2, %v65_v27, %v756_v24  ;;  %v99_v54 = vsel %vm88_vm2, %v63_v25, %v65_v27  ;;  %v97_v59 = vsel %vm88_vm2, %v756_v24, %v758_v26  ;;  %v397_v24 = vsub.s32 4, %v774_v36 }
  0xa2   :  { %v760_v28 = vpop.permute.xlu1 %72  ;;  %v762_v29 = vpop.permute.xlu0 %70 }
  0xa6   :  { %v764_v31 = vpop.permute.xlu1 %76  ;;  %v766_v32 = vpop.permute.xlu0 %74 }
  0xa7   :  { %v94_v30 = vsel %vm88_vm2, %v760_v28, %v766_v32 }
  0xaa   :  { %v770_v34 = vpop.permute.xlu1 %80  ;;  %v772_v35 = vpop.permute.xlu0 %78 }
  0xab   :  { %v92_v42 = vsel %vm88_vm2, %v764_v31, %v772_v35 }
  0xae   :  { %v782_v43 = vpop.permute.xlu1 %84  ;;  %v784_v44 = vpop.permute.xlu0 %82 }
  0xaf   :  { %v100_v61 = vsel %vm88_vm2, %v782_v43, %v63_v25  ;;  %v90_v38 = vsel %vm88_vm2, %v770_v34, %v784_v44 }
  0xb2   :  { %v104_v56 = vpop.permute.xlu1 %103  ;;  %v803_v58 = vpop.permute.xlu0 %101 }
  0xb3   :  { %v136_v62 = vsel %vm125_vm0, %v803_v58, %v104_v56 }
  0xb4   :  { %v329_v37 = vsel %vm791_vm1, %v136_v62, %v100_v61 }
  0xb5   :  { %v341_v41 = vadd.f32 %v329_v37, %v672_v4  ;;  %v146_v4 = vadd.s32 1152, %v768_v33 }
  0xb6   :  { %v108_v52 = vpop.permute.xlu1 %107  ;;  %v106_v61 = vpop.permute.xlu0 %105 }
  0xb7   :  { %v353_v55 = vmax.f32 %v341_v41, 1e-12  ;;  %v134_v62 = vsel %vm125_vm0, %v106_v61, %v108_v52  ;;  %v135_v37 = vsel %vm125_vm0, %v104_v56, %v106_v61  ;;  %v216_v46 = vand.u32 7, %v146_v4 }
  0xb8   :  { %v330_v25 = vsel %vm805_vm3, %v135_v37, %v99_v54  ;;  %v331_v27 = vsel %vm815_vm4, %v134_v62, %v98_v50  ;;  %v223_v50 = vand.u32 7, %v147_v53  ;;  %v393_v62 = vsub.s32 3, %v774_v36 }
  0xb9   :  { %520 = vrsqrt.f32 %v353_v55  ;;  %v342_v41 = vadd.f32 %v330_v25, %v684_v7  ;;  %v343_v56 = vadd.f32 %v331_v27, %v668_v3  ;;  %v96_v7 = vsel %vm88_vm2, %v758_v26, %v762_v29 }
  0xba   :  { %v112_v3 = vpop.permute.xlu1 %111  ;;  %v110_v63 = vpop.permute.xlu0 %109  ;;  %vm908_vm12 = vcmp.lt.s32.totalorder %v216_v46, 4  ;;  %vm916_vm13 = vcmp.lt.s32.totalorder %v223_v50, 4  ;;  %v398_v46 = vrot.slane %v788_v48, %v397_v24 }
  0xbb   :  { %v354_v54 = vmax.f32 %v342_v41, 1e-12  ;;  %v355_v47 = vmax.f32 %v343_v56, 1e-12  ;;  %v132_v55 = vsel %vm125_vm0, %v110_v63, %v112_v3  ;;  %v133_v49 = vsel %vm125_vm0, %v108_v52, %v110_v63 }
  0xbc   :  { %v332_v37 = vsel %vm819_vm5, %v133_v49, %v97_v59  ;;  %v333_v26 = vsel %vm827_vm6, %v132_v55, %v96_v7  ;;  %v95_v52 = vsel %vm88_vm2, %v762_v29, %v760_v28  ;;  %v394_v28 = vrot.slane %v788_v48, %v393_v62 }
  0xbd   :  { %522 = vrsqrt.f32 %v354_v54  ;;  %v344_v4 = vadd.f32 %v332_v37, %v680_v6  ;;  %v345_v53 = vadd.f32 %v333_v26, %v698_v11  ;;  %v401_v59 = vsub.s32 5, %v774_v36 }
  0xbe   :  { %524 = vrsqrt.f32 %v355_v47  ;;  %v116_v40 = vpop.permute.xlu1 %115  ;;  %v114_v27 = vpop.permute.xlu0 %113  ;;  %v93_v54 = vsel %vm88_vm2, %v766_v32, %v764_v31  ;;  %v406_v6 = vrot.slane %v788_v48, %v405_v51 }
  0xbf   :  { %v356_v11 = vmax.f32 %v344_v4, 1e-12  ;;  %v357_v39 = vmax.f32 %v345_v53, 1e-12  ;;  %v130_v41 = vsel %vm125_vm0, %v114_v27, %v116_v40  ;;  %v131_v29 = vsel %vm125_vm0, %v112_v3, %v114_v27 }
  0xc0   :  { %v334_v7 = vsel %vm832_vm7, %v131_v29, %v95_v52  ;;  %v335_v63 = vsel %vm840_vm8, %v130_v41, %v94_v30  ;;  %v402_v26 = vrot.slane %v788_v48, %v401_v59  ;;  %v91_v53 = vsel %vm88_vm2, %v772_v35, %v770_v34 }
  0xc1   :  { %526 = vrsqrt.f32 %v356_v11  ;;  %v346_v3 = vadd.f32 %v334_v7, %v694_v10  ;;  %v347_v50 = vadd.f32 %v335_v63, %v712_v15 }
  0xc2   :  { %528 = vrsqrt.f32 %v357_v39  ;;  %v120_v47 = vpop.permute.xlu1 %119  ;;  %v118_v55 = vpop.permute.xlu0 %117 }
  0xc3   :  { %v521_v49 = vpop.eup %520  ;;  %v358_v24 = vmax.f32 %v346_v3, 1e-12  ;;  %v359_v10 = vmax.f32 %v347_v50, 1e-12  ;;  %v128_v15 = vsel %vm125_vm0, %v118_v55, %v120_v47  ;;  %v129_v37 = vsel %vm125_vm0, %v116_v40, %v118_v55 }
  0xc4   :  { %v439_v32 = vmul.f32 %v521_v49, %v801_v57  ;;  %v336_v31 = vsel %vm868_vm9, %v129_v37, %v93_v54  ;;  %v337_v4 = vsel %vm872_vm10, %v128_v15, %v92_v42  ;;  %v89_v57 = vsel %vm88_vm2, %v784_v44, %v782_v43  ;;  %v49_v15 = vld [vmem:[#allocation5 + $0x8] sm:$0xf] }
  0xc5   :  { %530 = vrsqrt.f32 %v358_v24  ;;  %v348_v52 = vadd.f32 %v336_v31, %v708_v14  ;;  %v349_v30 = vadd.f32 %v337_v4, %v726_v19 }
  0xc6   :  { %v451_v61 = vadd.f32 1.0, %v439_v32  ;;  %532 = vrsqrt.f32 %v359_v10  ;;  %v124_v40 = vpop.permute.xlu1 %123  ;;  %v122_v27 = vpop.permute.xlu0 %121 }
  0xc7   :  { %v523_v35 = vpop.eup %522  ;;  %v360_v11 = vmax.f32 %v348_v52, 1e-12  ;;  %v361_v39 = vmax.f32 %v349_v30, 1e-12  ;;  %v137_v14 = vsel %vm125_vm0, %v124_v40, %v803_v58  ;;  %v126_v19 = vsel %vm125_vm0, %v122_v27, %v124_v40 }
  0xc8   :  { %v525_v43 = vpop.eup %524  ;;  %v463_v41 = vmax.f32 %v451_v61, 0.0  ;;  %v440_v29 = vmul.f32 %v523_v35, %v855_v60  ;;  %v340_v34 = vsel %vm896_vm11, %v137_v14, %v89_v57  ;;  %v127_v44 = vsel %vm125_vm0, %v120_v47, %v122_v27 }
  0xc9   :  { %v441_v59 = vmul.f32 %v525_v43, %v860_v45  ;;  %534 = vrsqrt.f32 %v360_v11  ;;  %v352_v7 = vadd.f32 %v340_v34, %v736_v22  ;;  %v338_v58 = vsel %vm908_vm12, %v127_v44, %v91_v53 }
  0xca   :  { %v475_v63 = vmul.f32 %v463_v41, %v662_v1  ;;  %v452_v3 = vadd.f32 1.0, %v440_v29  ;;  %536 = vrsqrt.f32 %v361_v39  ;;  %v339_v60 = vsel %vm916_vm13, %v126_v19, %v90_v38 }
  0xcb   :  { %v527_v25 = vpop.eup %526  ;;  %v453_v50 = vadd.f32 1.0, %v441_v59  ;;  %v364_v54 = vmax.f32 %v352_v7, 1e-12  ;;  %v350_v33 = vadd.f32 %v338_v58, %v722_v18  ;;  %v351_v45 = vadd.f32 %v339_v60, %v740_v23 }
  0xcc   :  { %v529_v42 = vpop.eup %528  ;;  %487 = vst [vmem:[#allocation7] sm:$0xff] %v475_v63  ;;  %v464_v22 = vmax.f32 %v452_v3, 0.0  ;;  %v442_v47 = vmul.f32 %v527_v25, %v394_v28  ;;  %v409_v1 = vsub.s32 7, %v774_v36  ;;  %v1049_v29 = vsub.s32 2, %v774_v36 }
  0xcd   :  { %v465_v55 = vmax.f32 %v453_v50, 0.0  ;;  %v443_v49 = vmul.f32 %v529_v42, %v398_v46  ;;  %538 = vrsqrt.f32 %v364_v54  ;;  %v362_v56 = vmax.f32 %v350_v33, 1e-12 }
  0xce   :  { %v476_v24 = vmul.f32 %v464_v22, %v674_v5  ;;  %v454_v10 = vadd.f32 1.0, %v442_v47  ;;  %v363_v37 = vmax.f32 %v351_v45, 1e-12  ;;  %v410_v4 = vrot.slane %v788_v48, %v409_v1 }
  0xcf   :  { %v531_v18 = vpop.eup %530  ;;  %v477_v23 = vmul.f32 %v465_v55, %v660_v0  ;;  %v455_v32 = vadd.f32 1.0, %v443_v49  ;;  %540 = vrsqrt.f32 %v362_v56  ;;  %v1047_v5 = vsub.s32 0, %v774_v36 }
  0xd0   :  { %v533_v31 = vpop.eup %532  ;;  %488 = vst [vmem:[#allocation7 + $0x8] sm:$0xff] %v476_v24  ;;  %v466_v28 = vmax.f32 %v454_v10, 0.0  ;;  %v444_v51 = vmul.f32 %v531_v18, %v402_v26  ;;  %542 = vrsqrt.f32 %v363_v37  ;;  %v426_v48 = vrot.slane %v49_v15, %v393_v62 }
  0xd1   :  { %489 = vst [vmem:[#allocation7 + $0x10] sm:$0xff] %v477_v23  ;;  %v467_v46 = vmax.f32 %v455_v32, 0.0  ;;  %v445_v53 = vmul.f32 %v533_v31, %v406_v6  ;;  %v414_v52 = vrot.slane %v49_v15, %v1047_v5  ;;  %v422_v34 = vrot.slane %v49_v15, %v1049_v29 }
  0xd2   :  { %v478_v30 = vmul.f32 %v466_v28, %v664_v2  ;;  %v456_v57 = vadd.f32 1.0, %v444_v51  ;;  %v1048_v2 = vsub.s32 1, %v774_v36 }
  0xd3   :  { %v535_v38 = vpop.eup %534  ;;  %v479_v0 = vmul.f32 %v467_v46, %v688_v9  ;;  %v457_v61 = vadd.f32 1.0, %v445_v53 }
  0xd4   :  { %v537_v40 = vpop.eup %536  ;;  %490 = vst [vmem:[#allocation7 + $0x18] sm:$0xff] %v478_v30  ;;  %v468_v27 = vmax.f32 %v456_v57, 0.0  ;;  %v446_v26 = vmul.f32 %v535_v38, %v410_v4  ;;  %v418_v19 = vrot.slane %v49_v15, %v1048_v2 }
  0xd5   :  { %491 = vst [vmem:[#allocation7 + $0x20] sm:$0xff] %v479_v0  ;;  %v469_v35 = vmax.f32 %v457_v61, 0.0  ;;  %v447_v11 = vmul.f32 %v537_v40, %v414_v52 }
  0xd6   :  { %v480_v39 = vmul.f32 %v468_v27, %v686_v8  ;;  %v458_v14 = vadd.f32 1.0, %v446_v26 }
  0xd7   :  { %v539_v43 = vpop.eup %538  ;;  %v481_v9 = vmul.f32 %v469_v35, %v702_v13  ;;  %v459_v41 = vadd.f32 1.0, %v447_v11 }
  0xd8   :  { %492 = vst [vmem:[#allocation7 + $0x28] sm:$0xff] %v480_v39  ;;  %v470_v44 = vmax.f32 %v458_v14, 0.0  ;;  %v450_v59 = vmul.f32 %v539_v43, %v426_v48 }
  0xd9   :  { %v541_v62 = vpop.eup %540  ;;  %493 = vst [vmem:[#allocation7 + $0x30] sm:$0xff] %v481_v9  ;;  %v471_v7 = vmax.f32 %v459_v41, 0.0 }
  0xda   :  { %v543_v58 = vpop.eup %542  ;;  %v482_v8 = vmul.f32 %v470_v44, %v700_v12  ;;  %v462_v63 = vadd.f32 1.0, %v450_v59  ;;  %v448_v3 = vmul.f32 %v541_v62, %v418_v19 }
  0xdb   :  { %v483_v60 = vmul.f32 %v471_v7, %v716_v17  ;;  %v449_v25 = vmul.f32 %v543_v58, %v422_v34 }
  0xdc   :  { %494 = vst [vmem:[#allocation7 + $0x38] sm:$0xff] %v482_v8  ;;  %v474_v13 = vmax.f32 %v462_v63, 0.0  ;;  %v460_v50 = vadd.f32 1.0, %v448_v3 }
  0xdd   :  { %495 = vst [vmem:[#allocation7 + $0x40] sm:$0xff] %v483_v60  ;;  %v461_v36 = vadd.f32 1.0, %v449_v25 }
  0xde   :  { %v486_v54 = vmul.f32 %v474_v13, %v728_v20  ;;  %v472_v33 = vmax.f32 %v460_v50, 0.0 }
  0xdf   :  { %v473_v45 = vmax.f32 %v461_v36, 0.0 }
  0xe0   :  { %498 = vst [vmem:[#allocation7 + $0x58] sm:$0xff] %v486_v54  ;;  %v484_v42 = vmul.f32 %v472_v33, %v714_v16 }
  0xe1   :  { %v485_v12 = vmul.f32 %v473_v45, %v730_v21 }
  0xe2   :  { %496 = vst [vmem:[#allocation7 + $0x48] sm:$0xff] %v484_v42 }
  0xe3   :  { %497 = vst [vmem:[#allocation7 + $0x50] sm:$0xff] %v485_v12 }
  0xe4   :  { %599 = shalt.err (!%p596_p6)
}
  0xe5   :  { %s600_s10 = scalar_lea.hbm %s1019_s2, 1536 }
  0xe6   :  { %p601_p7 = scmp.ne.s32.totalorder %s1019_s2, %s600_s10  ;;  %p604_p8 = scmp.lt.u32.totalorder %s600_s10, %s1019_s2 }
  0xe8   :  { %p606_p9 = pnand %p604_p8, %p601_p7 }
  0xea   :  { %609 = shalt.err (!%p606_p9)
}
  0xeb   :  { %508 = dma.vmem_to_hbm [thread:$0]  %s506_s6, 1536, %s1019_s2, [#allocation4]  }
  0xec   :  { %614 = dma.done.wait [#allocation4], 1536  }
  0xed   :  { %615 = vsyncadd [#allocation4], 4294965760 }
  0xee   :  { %512 = vsyncpa [#allocation3], 1 }
  0xef   :  { %513 = vsyncpa [#allocation6], 1 }
  0xf0   :  { %514 = vsyncpa [#allocation4], 1 }

</bundles_post_ra>
